<compile_context>
chip_gen: v7x
topology: tpu7x:2x2x1
jax: 0.10.0
libtpu: 0.0.40
codegen_flags: <defaults>
</compile_context>

<pallas_src>
import functools

import jax
import jax.numpy as jnp
from jax import lax
from jax.experimental import pallas as pl
from jax.experimental.pallas import tpu as pltpu


def _generate_block_kernel(latent_ref, w1_ref, w2_ref, out_ref, h_ref, *,
                           eps, neg_slope, true_d, w2_resident):
    j = pl.program_id(1)
    tn = out_ref.shape[1]

    # fc1 + InstanceNorm1d + LeakyReLU: computed once per batch tile (j == 0),
    # kept resident in VMEM scratch (already in the fc2 matmul dtype) and reused
    # across all output (S) tiles.
    @pl.when(j == 0)
    def _():
        h = jnp.dot(latent_ref[...], w1_ref[...],
                    preferred_element_type=jnp.float32)          # (tb, D_pad) f32
        # One-pass statistics over the TRUE fin_dim (padded columns are zero and
        # do not perturb the sums); clamp the variance against cancellation.
        inv_d = 1.0 / true_d
        mean = jnp.sum(h, axis=-1, keepdims=True) * inv_d
        msq = jnp.sum(h * h, axis=-1, keepdims=True) * inv_d
        var = jnp.maximum(msq - mean * mean, 0.0)
        hn = (h - mean) * lax.rsqrt(var + eps)                   # f32 normalization
        hn = jnp.where(hn > 0, hn, neg_slope * hn)               # LeakyReLU(0.01)
        h_ref[...] = hn.astype(h_ref.dtype)                      # single cast

    # fc2: Linear(fin_dim -> sum_channels, no bias), one lane-dense output tile.
    if w2_resident:
        # w2 lives fully in VMEM (constant index_map -> DMA'd once); slice the
        # current lane-aligned column window.
        col = pl.multiple_of(j * tn, 128)
        w2 = w2_ref[:, pl.ds(col, tn)]
    else:
        w2 = w2_ref[...]
    out = jnp.dot(h_ref[...], w2, preferred_element_type=jnp.float32)
    out_ref[...] = out.astype(out_ref.dtype)


def _round_up(x, m):
    return (x + m - 1) // m * m


def generate_block_forward(latent, w1_t, w2_t, channels, *,
                           block_b=256, block_s=2048,
                           fc1_bf16=False, fc2_bf16=True,
                           out_dtype=jnp.float32,
                           w2_resident_max_bytes=6 * 1024 * 1024):
    """latent: (B, fin_dim); w1_t: (fin_dim, fin_dim); w2_t: (fin_dim, sum_channels).

    Weights are pre-transposed so the kernel computes plain x @ w on the MXU.
    All dtype casts happen here (once, in HBM), never per-tile in the kernel.
    """
    B, D = latent.shape
    S = w2_t.shape[1]
    assert S == channels[0] * channels[1] * channels[2] * channels[3]
    assert w1_t.shape == (D, D) and w2_t.shape[0] == D

    latent = latent.astype(jnp.float32)
    w1_t = w1_t.astype(jnp.float32)
    w2_t = w2_t.astype(jnp.float32)

    # --- fin_dim padding to a lane multiple (128) ----------------------------
    D_pad = _round_up(D, 128)
    if D_pad != D:
        latent = jnp.pad(latent, ((0, 0), (0, D_pad - D)))
        w1_t = jnp.pad(w1_t, ((0, D_pad - D), (0, D_pad - D)))
        w2_t = jnp.pad(w2_t, ((0, D_pad - D), (0, 0)))          # zero rows kill pad cols

    # --- batch tiling: multiple of 8 sublanes --------------------------------
    B_pad = _round_up(B, 8)
    tb = min(block_b, B_pad)
    B_pad = _round_up(B_pad, tb)
    if B_pad != B:
        latent = jnp.pad(latent, ((0, B_pad - B), (0, 0)))      # zero rows -> zero out

    # --- output (S) tiling: 128-multiple, prefer 256-multiples (v6e/v7x MXU) --
    tn = min(block_s, _round_up(S, 128))
    if tn >= 256:
        tn = (tn // 256) * 256
    tn = max(128, (tn // 128) * 128)
    S_pad = _round_up(S, tn)
    if S_pad != S:
        w2_t = jnp.pad(w2_t, ((0, 0), (0, S_pad - S)))

    # --- dtype placement ------------------------------------------------------
    if fc1_bf16:
        latent = latent.astype(jnp.bfloat16)
        w1_t = w1_t.astype(jnp.bfloat16)
    if fc2_bf16:
        w2_t = w2_t.astype(jnp.bfloat16)
    h_dtype = jnp.bfloat16 if fc2_bf16 else jnp.float32

    # --- keep w2 fully VMEM-resident when it fits the budget ------------------
    w2_itemsize = 2 if fc2_bf16 else 4
    w2_resident = D_pad * S_pad * w2_itemsize <= w2_resident_max_bytes
    w2_block = (D_pad, S_pad) if w2_resident else (D_pad, tn)
    w2_index_map = (lambda i, j: (0, 0)) if w2_resident else (lambda i, j: (0, j))

    grid = (B_pad // tb, S_pad // tn)

    # VMEM footprint estimate (double-buffered pipeline) -> explicit limit,
    # so larger tiles don't trip v5e's 16 MiB scoped default.
    fc1_itemsize = 2 if fc1_bf16 else 4
    out_itemsize = jnp.dtype(out_dtype).itemsize
    est = (2 * tb * D_pad * fc1_itemsize                     # latent blocks
           + 2 * D_pad * D_pad * fc1_itemsize                # w1 (resident, const idx)
           + 2 * w2_block[0] * w2_block[1] * w2_itemsize     # w2 blocks
           + 2 * tb * tn * out_itemsize                      # output blocks
           + tb * D_pad * (2 if fc2_bf16 else 4))            # h scratch
    vmem_limit = int(min(128 * 2 ** 20, max(32 * 2 ** 20, est * 5 // 4)))

    kernel = functools.partial(_generate_block_kernel, eps=1e-5, neg_slope=0.01,
                               true_d=D, w2_resident=w2_resident)

    style_flat = pl.pallas_call(
        kernel,
        out_shape=jax.ShapeDtypeStruct((B_pad, S_pad), out_dtype),
        grid_spec=pltpu.PrefetchScalarGridSpec(
            num_scalar_prefetch=0,
            grid=grid,
            in_specs=[
                # latent stays resident across the S axis (constant block index
                # over j -> no re-DMA); w1 is constant over the whole grid.
                pl.BlockSpec((tb, D_pad), lambda i, j: (i, 0)),
                pl.BlockSpec((D_pad, D_pad), lambda i, j: (0, 0)),
                # w2: fully resident (const index map -> one HBM read per core)
                # when it fits, else streamed per output tile.
                pl.BlockSpec(w2_block, w2_index_map),
            ],
            out_specs=pl.BlockSpec((tb, tn), lambda i, j: (i, j)),
            scratch_shapes=[pltpu.VMEM((tb, D_pad), h_dtype)],
        ),
        compiler_params=pltpu.CompilerParams(
            # Batch tiles are independent -> "parallel" (dual-TC sharding on v7x).
            # The S axis carries the h scratch residency -> "arbitrary", last.
            dimension_semantics=("parallel", "arbitrary"),
            vmem_limit_bytes=vmem_limit),
    )(latent, w1_t, w2_t)

    # Drop padding, then the 5-D view — pure reshape glue, outside the kernel.
    style_flat = style_flat[:B, :S]
    return style_flat.reshape(B, channels[0], channels[1], channels[2], channels[3])


def _reference_forward(latent, w1_t, w2_t, channels):
    h = latent @ w1_t
    mean = jnp.mean(h, axis=-1, keepdims=True)
    var = jnp.mean((h - mean) ** 2, axis=-1, keepdims=True)
    h = (h - mean) / jnp.sqrt(var + 1e-5)
    h = jnp.where(h > 0, h, 0.01 * h)
    out = h @ w2_t
    return out.reshape(latent.shape[0], *channels)


if __name__ == "__main__":
    # Small shapes consistent with the module.
    B = 2
    fin_dim = 32
    channels = (2, 4, 4, 4)                 # sum_channels = 128
    sum_channels = channels[0] * channels[1] * channels[2] * channels[3]

    key = jax.random.PRNGKey(0)
    k_lat, k_w1, k_w2 = jax.random.split(key, 3)

    latent = jax.random.normal(k_lat, (B, fin_dim), dtype=jnp.float32)
    # Deterministic synthetic weights (already transposed for x @ w).
    w1_t = jax.random.normal(k_w1, (fin_dim, fin_dim), dtype=jnp.float32) * 0.1
    w2_t = jax.random.normal(k_w2, (fin_dim, sum_channels), dtype=jnp.float32) * 0.1

    ref = _reference_forward(latent, w1_t, w2_t, channels)

    # 1) Strict-parity path: everything f32, tight tolerance vs the reference.
    out_f32 = generate_block_forward(latent, w1_t, w2_t, channels,
                                     fc1_bf16=False, fc2_bf16=False)
    out_f32 = jax.block_until_ready(out_f32)
    assert out_f32.shape == (B, *channels), out_f32.shape
    assert jnp.allclose(out_f32, ref, atol=1e-4, rtol=1e-4), "f32 mismatch vs reference"

    # 2) Production default: bf16 fc2 weights/scratch (cast once in the wrapper),
    #    f32 fc1 + InstanceNorm. Looser tolerance reflects bf16 operand rounding.
    out_bf16 = generate_block_forward(latent, w1_t, w2_t, channels)
    out_bf16 = jax.block_until_ready(out_bf16)
    assert out_bf16.shape == (B, *channels), out_bf16.shape
    assert jnp.allclose(out_bf16, ref, atol=3e-2, rtol=3e-2), "bf16 mismatch vs reference"

    print("KERNEL_OK")
</pallas_src>

<mosaic_0001>
module attributes {stable_mosaic.version = 11 : i64} {
  func.func @_generate_block_kernel(%arg0: i32, %arg1: i32, %arg2: memref<8x128xf32, #tpu.memory_space<vmem>>, %arg3: memref<128x128xf32, #tpu.memory_space<vmem>>, %arg4: memref<128x128xf32, #tpu.memory_space<vmem>>, %arg5: memref<8x128xf32, #tpu.memory_space<vmem>>, %arg6: memref<8x128xf32, #tpu.memory_space<vmem>>) attributes {dimension_semantics = [#tpu.dimension_semantics<parallel>, #tpu.dimension_semantics<arbitrary>], iteration_bounds = array<i64: 1, 1>, scalar_prefetch = 0 : i64, scratch_operands = 1 : i64, tpu.core_type = #tpu.core_type<tc>, window_params = [{transform_indices = @transform_0, window_bounds = array<i64: 8, 128>}, {pipeline_mode = #tpu.pipeline_mode<synchronous>, transform_indices = @transform_1, window_bounds = array<i64: 128, 128>}, {pipeline_mode = #tpu.pipeline_mode<synchronous>, transform_indices = @transform_2, window_bounds = array<i64: 128, 128>}, {transform_indices = @transform_3, window_bounds = array<i64: 8, 128>}]} {
    %c0_i32 = arith.constant 0 : i32
    %0 = arith.cmpi eq, %arg1, %c0_i32 : i32
    %1 = arith.extui %0 : i1 to i32
    %c0_i32_0 = arith.constant 0 : i32
    %2 = arith.cmpi ne, %1, %c0_i32_0 : i32
    scf.if %2 {
      %c0_5 = arith.constant 0 : index
      %c0_6 = arith.constant 0 : index
      %10 = vector.load %arg2[%c0_5, %c0_6] : memref<8x128xf32, #tpu.memory_space<vmem>>, vector<8x128xf32>
      %c0_7 = arith.constant 0 : index
      %c0_8 = arith.constant 0 : index
      %11 = vector.load %arg3[%c0_7, %c0_8] : memref<128x128xf32, #tpu.memory_space<vmem>>, vector<128x128xf32>
      %cst_9 = arith.constant dense<0.000000e+00> : vector<8x128xf32>
      %12 = tpu.matmul %10, %11, %cst_9 {dimension_numbers = #tpu.dot_dimension_numbers<[1], [0], [0], [1], [0, 0, 1, 1], [], []>} : vector<8x128xf32>, vector<128x128xf32>, vector<8x128xf32> -> vector<8x128xf32>
      %cst_10 = arith.constant dense<0.000000e+00> : vector<8xf32>
      %13 = vector.multi_reduction <add>, %12, %cst_10 [1] : vector<8x128xf32> to vector<8xf32>
      %14 = vector.shape_cast %13 : vector<8xf32> to vector<8x1xf32>
      %cst_11 = arith.constant 3.125000e-02 : f32
      %15 = vector.broadcast %cst_11 : f32 to vector<8x1xf32>
      %16 = arith.mulf %14, %15 : vector<8x1xf32>
      %17 = arith.mulf %12, %12 : vector<8x128xf32>
      %cst_12 = arith.constant dense<0.000000e+00> : vector<8xf32>
      %18 = vector.multi_reduction <add>, %17, %cst_12 [1] : vector<8x128xf32> to vector<8xf32>
      %19 = vector.shape_cast %18 : vector<8xf32> to vector<8x1xf32>
      %cst_13 = arith.constant 3.125000e-02 : f32
      %20 = vector.broadcast %cst_13 : f32 to vector<8x1xf32>
      %21 = arith.mulf %19, %20 : vector<8x1xf32>
      %22 = arith.mulf %16, %16 : vector<8x1xf32>
      %23 = arith.subf %21, %22 : vector<8x1xf32>
      %cst_14 = arith.constant 0.000000e+00 : f32
      %24 = vector.broadcast %cst_14 : f32 to vector<8x1xf32>
      %25 = arith.maximumf %23, %24 : vector<8x1xf32>
      %26 = vector.broadcast %16 : vector<8x1xf32> to vector<8x128xf32>
      %27 = arith.subf %12, %26 : vector<8x128xf32>
      %cst_15 = arith.constant 9.99999974E-6 : f32
      %28 = vector.broadcast %cst_15 : f32 to vector<8x1xf32>
      %29 = arith.addf %25, %28 : vector<8x1xf32>
      %30 = math.rsqrt %29 : vector<8x1xf32>
      %31 = vector.broadcast %30 : vector<8x1xf32> to vector<8x128xf32>
      %32 = arith.mulf %27, %31 : vector<8x128xf32>
      %cst_16 = arith.constant 0.000000e+00 : f32
      %33 = vector.broadcast %cst_16 : f32 to vector<8x128xf32>
      %34 = arith.cmpf ogt, %32, %33 : vector<8x128xf32>
      %cst_17 = arith.constant 0.00999999977 : f32
      %35 = vector.broadcast %cst_17 : f32 to vector<8x128xf32>
      %36 = arith.mulf %35, %32 : vector<8x128xf32>
      %37 = arith.select %34, %32, %36 : vector<8x128xi1>, vector<8x128xf32>
      %c0_18 = arith.constant 0 : index
      %c0_19 = arith.constant 0 : index
      %38 = vector.load %arg6[%c0_18, %c0_19] : memref<8x128xf32, #tpu.memory_space<vmem>>, vector<8x128xf32>
      tpu.vector_store %arg6[%c0_18, %c0_19], %37 {strides = array<i32>} : memref<8x128xf32, #tpu.memory_space<vmem>>, vector<8x128xf32>,
    } else {
    }
    %c128_i32 = arith.constant 128 : i32
    %3 = arith.muli %arg1, %c128_i32 : i32
    %4 = tpu.assume_multiple %3, 128 : i32
    %c0 = arith.constant 0 : index
    %5 = arith.index_cast %4 : i32 to index
    %6 = vector.load %arg4[%c0, %5] : memref<128x128xf32, #tpu.memory_space<vmem>>, vector<128x128xf32>
    %c0_1 = arith.constant 0 : index
    %c0_2 = arith.constant 0 : index
    %7 = vector.load %arg6[%c0_1, %c0_2] : memref<8x128xf32, #tpu.memory_space<vmem>>, vector<8x128xf32>
    %cst = arith.constant dense<0.000000e+00> : vector<8x128xf32>
    %8 = tpu.matmul %7, %6, %cst {dimension_numbers = #tpu.dot_dimension_numbers<[1], [0], [0], [1], [0, 0, 1, 1], [], []>} : vector<8x128xf32>, vector<128x128xf32>, vector<8x128xf32> -> vector<8x128xf32>
    %c0_3 = arith.constant 0 : index
    %c0_4 = arith.constant 0 : index
    %9 = vector.load %arg5[%c0_3, %c0_4] : memref<8x128xf32, #tpu.memory_space<vmem>>, vector<8x128xf32>
    tpu.vector_store %arg5[%c0_3, %c0_4], %8 {strides = array<i32>} : memref<8x128xf32, #tpu.memory_space<vmem>>, vector<8x128xf32>,
    return
  }
  func.func @transform_0(%arg0: i32, %arg1: i32) -> (i32, i32) {
    %c0_i32 = arith.constant 0 : i32
    %c0_i32_0 = arith.constant 0 : i32
    return %arg0, %c0_i32 : i32, i32
  }
  func.func @transform_1(%arg0: i32, %arg1: i32) -> (i32, i32) {
    %c0_i32 = arith.constant 0 : i32
    %c0_i32_0 = arith.constant 0 : i32
    %c0_i32_1 = arith.constant 0 : i32
    return %c0_i32, %c0_i32_0 : i32, i32
  }
  func.func @transform_2(%arg0: i32, %arg1: i32) -> (i32, i32) {
    %c0_i32 = arith.constant 0 : i32
    %c0_i32_0 = arith.constant 0 : i32
    %c0_i32_1 = arith.constant 0 : i32
    return %c0_i32, %c0_i32_0 : i32, i32
  }
  func.func @transform_3(%arg0: i32, %arg1: i32) -> (i32, i32) {
    %c0_i32 = arith.constant 0 : i32
    return %arg0, %arg1 : i32, i32
  }
}

</mosaic_0001>

<bundles_post_ra>
// kernel: tpu_custom_call.1
= control target key start
LH: loop header
LB: loop body
LE: loop exit
PB: predicated region body
PF: predicated region fallthrough
CT: control target
= control target key end

     0   :  { %8 = vsyncpa [#allocation4], 0  ;;  %s628_s0 = inlined_call_operand.hbm [shape: f32[8,128], index: 0, kind: input, shape index: {}]   ;;  %s629_s1 = inlined_call_operand.hbm [shape: f32[128,128], index: 1, kind: input, shape index: {}]   ;;  %s630_s2 = inlined_call_operand.hbm [shape: f32[128,128], index: 2, kind: input, shape index: {}]   ;;  %s631_s3 = inlined_call_operand.hbm [shape: f32[8,128], index: 3, kind: output, shape index: {}]  }
   0x1   :  { %9 = vsyncpa [#allocation7], 0 }
   0x2   :  { %10 = vsyncpa [#allocation5], 0  ;;  %s529_s12 = smov [#allocation6]   ;;  %s435_s16 = scalar_lea.hbm %s629_s1, 2048 }
   0x3   :  { %s26_s13 = sshll.u32 %s529_s12, 4  ;;  %p436_p0 = scmp.ne.s32.totalorder %s629_s1, %s435_s16  ;;  %s27_s13 = int_to_ptr.vmem [resolvable:$true] %s26_s13 }
   0x4   :  { %p439_p1 = scmp.lt.u32.totalorder %s435_s16, %s629_s1 }
   0x6   :  { %p441_p2 = pnand %p439_p1, %p436_p0 }
   0x8   :  { %444 = shalt.err (!%p441_p2)
}
   0x9   :  { %s445_s21 = scalar_lea.vmem %s27_s13, 2048  ;;  %p450_p4 = scmp.lt.s32.totalorder %s27_s13, %s27_s13 }
   0xa   :  { %p446_p3 = scmp.ne.s32.totalorder %s27_s13, %s445_s21  ;;  %p451_p5 = scmp.lt.s32.totalorder %s445_s21, %s445_s21 }
   0xc   :  { %p452_p6 = por %p451_p5, %p450_p4 }
   0xe   :  { %p453_p7 = pnand %p452_p6, %p446_p3 }
  0x10   :  { %456 = shalt.err (!%p453_p7)
}
  0x11   :  { %s530_s22 = smov 128   ;;  %s531_s23 = smov 8  }
  0x12   :  { %32 = dma.hbm_to_vmem [thread:$0]  %s629_s1, 2048, %s27_s13, [#allocation7], %s530_s22, %s530_s22, %s531_s23  }
  0x13   :  { %s532_s26 = smov [#allocation3]   ;;  %s533_s28 = smov [#allocation8]  }
  0x14   :  { %s17_s27 = sshll.u32 %s532_s26, 4  ;;  %s38_s29 = sshll.u32 %s533_s28, 4  ;;  %s18_s27 = int_to_ptr.vmem [resolvable:$true] %s17_s27  ;;  %s39_s29 = int_to_ptr.vmem [resolvable:$true] %s38_s29 }
  0x15   :  { %s457_s5 = scalar_lea.hbm %s628_s0, 128 }
  0x16   :  { %p458_p8 = scmp.ne.s32.totalorder %s628_s0, %s457_s5  ;;  %p461_p9 = scmp.lt.u32.totalorder %s457_s5, %s628_s0 }
  0x18   :  { %p463_p10 = pnand %p461_p9, %p458_p8 }
  0x1a   :  { %466 = shalt.err (!%p463_p10)
}
  0x1b   :  { %s467_s1 = scalar_lea.vmem %s18_s27, 128  ;;  %p472_p12 = scmp.lt.s32.totalorder %s18_s27, %s18_s27 }
  0x1c   :  { %p468_p11 = scmp.ne.s32.totalorder %s18_s27, %s467_s1  ;;  %p473_p13 = scmp.lt.s32.totalorder %s467_s1, %s467_s1 }
  0x1e   :  { %p474_p0 = por %p473_p13, %p472_p12 }
  0x20   :  { %p475_p1 = pnand %p474_p0, %p468_p11 }
  0x22   :  { %478 = shalt.err (!%p475_p1)
}
  0x23   :  { %20 = dma.hbm_to_vmem [thread:$0]  %s628_s0, 128, %s18_s27, [#allocation4]  }
  0x24   :  { %s479_s14 = scalar_lea.hbm %s630_s2, 2048 }
  0x25   :  { %p480_p2 = scmp.ne.s32.totalorder %s630_s2, %s479_s14  ;;  %p483_p3 = scmp.lt.u32.totalorder %s479_s14, %s630_s2 }
  0x27   :  { %p485_p4 = pnand %p483_p3, %p480_p2 }
  0x29   :  { %488 = shalt.err (!%p485_p4)
}
  0x2a   :  { %s489_s19 = scalar_lea.vmem %s39_s29, 2048  ;;  %p494_p6 = scmp.lt.s32.totalorder %s39_s29, %s39_s29 }
  0x2b   :  { %p490_p5 = scmp.ne.s32.totalorder %s39_s29, %s489_s19  ;;  %p495_p7 = scmp.lt.s32.totalorder %s489_s19, %s489_s19 }
  0x2d   :  { %p496_p8 = por %p495_p7, %p494_p6 }
  0x2f   :  { %p497_p9 = pnand %p496_p8, %p490_p5 }
  0x31   :  { %500 = shalt.err (!%p497_p9)
}
  0x32   :  { %44 = dma.hbm_to_vmem [thread:$0]  %s630_s2, 2048, %s39_s29, [#allocation7], %s530_s22, %s530_s22, %s531_s23  }
  0x33   :  { %523 = dma.done.wait [#allocation4], 128  }
  0x34   :  { %524 = vsyncadd [#allocation4], 4294967168 }
  0x35   :  { %525 = dma.done.wait [#allocation7], 4096  }
  0x36   :  { %526 = vsyncadd [#allocation7], 4294963200  ;;  %v534_v0 = vmov 0.0|0.0   ;;  %vm535_vm0 = vmmov 0   ;;  %v536_v1 = vmov 0.0   ;;  %v59_v2 = vld [vmem:[#allocation6] sm:$0xff] }
  0x37   :  { %376 = vmatprep.subr.bf16.mxu0 %v534_v0  ;;  %338 = vmatprep.mubr.msk.f32.mxu0 %vm535_vm0, %v536_v1  ;;  %v60_v3 = vld [vmem:[#allocation6 + $0x8] sm:$0xff]  ;;  %v61_v4 = vld [vmem:[#allocation6 + $0x10] sm:$0xff]  ;;  %v62_v6 = vld [vmem:[#allocation6 + $0x18] sm:$0xff]  ;;  %s537_s2 = smov [#allocation9]  }
  0x38   :  { %400 = vmatprep.subr.bf16.mxu1 %v534_v0  ;;  %373 = vmatprep.mubr.msk.f32.mxu1 %vm535_vm0, %v536_v1  ;;  %v377_v5 = vpack.c.bf16 %v60_v3, %v59_v2  ;;  %v380_v7 = vpack.c.bf16 %v62_v6, %v61_v4  ;;  %v63_v8 = vld [vmem:[#allocation6 + $0x20] sm:$0xff]  ;;  %v64_v9 = vld [vmem:[#allocation6 + $0x28] sm:$0xff]  ;;  %v65_v11 = vld [vmem:[#allocation6 + $0x30] sm:$0xff]  ;;  %s261_s21 = sshll.u32 %s537_s2, 4  ;;  %s262_s21 = int_to_ptr.vmem [resolvable:$true] %s261_s21 }
  0x39   :  { %v383_v10 = vpack.c.bf16 %v64_v9, %v63_v8  ;;  %v66_v12 = vld [vmem:[#allocation6 + $0x38] sm:$0xff]  ;;  %v67_v14 = vld [vmem:[#allocation6 + $0x40] sm:$0xff]  ;;  %v68_v15 = vld [vmem:[#allocation6 + $0x48] sm:$0xff]  ;;  %s501_s22 = scalar_lea.vmem %s262_s21, 128  ;;  %p506_p11 = scmp.lt.s32.totalorder %s262_s21, %s262_s21 }
  0x3a   :  { %378 = vmatpush3.bf16.msra.mxu0 %v377_v5  ;;  %v386_v13 = vpack.c.bf16 %v66_v12, %v65_v11  ;;  %v389_v16 = vpack.c.bf16 %v68_v15, %v67_v14  ;;  %v69_v17 = vld [vmem:[#allocation6 + $0x50] sm:$0xff]  ;;  %v70_v18 = vld [vmem:[#allocation6 + $0x58] sm:$0xff]  ;;  %v71_v20 = vld [vmem:[#allocation6 + $0x60] sm:$0xff]  ;;  %p502_p10 = scmp.ne.s32.totalorder %s262_s21, %s501_s22  ;;  %p507_p12 = scmp.lt.s32.totalorder %s501_s22, %s501_s22 }
  0x3b   :  { %379 = vmatprep.subr.bf16.mxu0 %v534_v0  ;;  %v392_v19 = vpack.c.bf16 %v70_v18, %v69_v17  ;;  %v72_v21 = vld [vmem:[#allocation6 + $0x68] sm:$0xff]  ;;  %v73_v23 = vld [vmem:[#allocation6 + $0x70] sm:$0xff]  ;;  %v74_v24 = vld [vmem:[#allocation6 + $0x78] sm:$0xff] }
  0x3c   :  { %v395_v22 = vpack.c.bf16 %v72_v21, %v71_v20  ;;  %v398_v25 = vpack.c.bf16 %v74_v24, %v73_v23  ;;  %v58_v26 = vld [vmem:[#allocation3] sm:$0xff]  ;;  %v167_v27 = vld [vmem:[#allocation8] sm:$0xff]  ;;  %v168_v28 = vld [vmem:[#allocation8 + $0x8] sm:$0xff]  ;;  %p508_p13 = por %p507_p12, %p506_p11 }
  0x3d   :  { %v401_v29 = vpack.c.bf16 %v168_v28, %v167_v27  ;;  %v169_v33 = vld [vmem:[#allocation8 + $0x10] sm:$0xff]  ;;  %v170_v34 = vld [vmem:[#allocation8 + $0x18] sm:$0xff]  ;;  %v171_v36 = vld [vmem:[#allocation8 + $0x20] sm:$0xff] }
  0x3e   :  { %381 = vmatpush3.bf16.msra.mxu0 %v380_v7  ;;  %v404_v35 = vpack.c.bf16 %v170_v34, %v169_v33  ;;  %v172_v37 = vld [vmem:[#allocation8 + $0x28] sm:$0xff]  ;;  %v173_v39 = vld [vmem:[#allocation8 + $0x30] sm:$0xff]  ;;  %v174_v40 = vld [vmem:[#allocation8 + $0x38] sm:$0xff]  ;;  %p509_p0 = pnand %p508_p13, %p502_p10 }
  0x3f   :  { %382 = vmatprep.subr.bf16.mxu0 %v534_v0  ;;  %402 = vmatpush3.bf16.msra.mxu1 %v401_v29  ;;  %v407_v38 = vpack.c.bf16 %v172_v37, %v171_v36  ;;  %v410_v41 = vpack.c.bf16 %v174_v40, %v173_v39  ;;  %v175_v42 = vld [vmem:[#allocation8 + $0x40] sm:$0xff]  ;;  %v176_v43 = vld [vmem:[#allocation8 + $0x48] sm:$0xff]  ;;  %v177_v45 = vld [vmem:[#allocation8 + $0x50] sm:$0xff] }
  0x40   :  { %403 = vmatprep.subr.bf16.mxu1 %v534_v0  ;;  %v413_v44 = vpack.c.bf16 %v176_v43, %v175_v42  ;;  %v178_v46 = vld [vmem:[#allocation8 + $0x58] sm:$0xff]  ;;  %v179_v48 = vld [vmem:[#allocation8 + $0x60] sm:$0xff]  ;;  %v180_v49 = vld [vmem:[#allocation8 + $0x68] sm:$0xff] }
  0x41   :  { %v416_v47 = vpack.c.bf16 %v178_v46, %v177_v45  ;;  %v419_v50 = vpack.c.bf16 %v180_v49, %v179_v48  ;;  %v181_v51 = vld [vmem:[#allocation8 + $0x70] sm:$0xff]  ;;  %v182_v52 = vld [vmem:[#allocation8 + $0x78] sm:$0xff] }
  0x42   :  { %384 = vmatpush3.bf16.msra.mxu0 %v383_v10  ;;  %v422_v53 = vpack.c.bf16 %v182_v52, %v181_v51 }
  0x43   :  { %385 = vmatprep.subr.bf16.mxu0 %v534_v0  ;;  %405 = vmatpush3.bf16.msra.mxu1 %v404_v35 }
  0x44   :  { %406 = vmatprep.subr.bf16.mxu1 %v534_v0 }
  0x46   :  { %387 = vmatpush3.bf16.msra.mxu0 %v386_v13 }
  0x47   :  { %388 = vmatprep.subr.bf16.mxu0 %v534_v0  ;;  %408 = vmatpush3.bf16.msra.mxu1 %v407_v38 }
  0x48   :  { %409 = vmatprep.subr.bf16.mxu1 %v534_v0 }
  0x4a   :  { %390 = vmatpush3.bf16.msra.mxu0 %v389_v16 }
  0x4b   :  { %391 = vmatprep.subr.bf16.mxu0 %v534_v0  ;;  %411 = vmatpush3.bf16.msra.mxu1 %v410_v41 }
  0x4c   :  { %412 = vmatprep.subr.bf16.mxu1 %v534_v0 }
  0x4e   :  { %393 = vmatpush3.bf16.msra.mxu0 %v392_v19 }
  0x4f   :  { %394 = vmatprep.subr.bf16.mxu0 %v534_v0  ;;  %414 = vmatpush3.bf16.msra.mxu1 %v413_v44 }
  0x50   :  { %415 = vmatprep.subr.bf16.mxu1 %v534_v0 }
  0x52   :  { %396 = vmatpush3.bf16.msra.mxu0 %v395_v22 }
  0x53   :  { %397 = vmatprep.subr.bf16.mxu0 %v534_v0  ;;  %417 = vmatpush3.bf16.msra.mxu1 %v416_v47 }
  0x54   :  { %418 = vmatprep.subr.bf16.mxu1 %v534_v0 }
  0x56   :  { %399 = vmatpush3.bf16.msra.mxu0 %v398_v25 }
  0x57   :  { %420 = vmatpush3.bf16.msra.mxu1 %v419_v50 }
  0x58   :  { %421 = vmatprep.subr.bf16.mxu1 %v534_v0 }
  0x59   :  { %339 = vmatmul.mubr.f32.vlgmr.msra.gmra.mrb[0].mxu0 %v58_v26 }
  0x5b   :  { %423 = vmatpush3.bf16.msra.mxu1 %v422_v53 }
 0x12c   :  { %v141_v30 = vpop.f32.mrb[0].mxu0 }
 0x12d   :  { %145 = vadd.xlane.f32.xlu0 %v141_v30  ;;  %v340_v31 = vpop.f32.mrb[1].mxu0  ;;  %v148_v32 = vmul.f32 %v141_v30, %v141_v30 }
 0x131   :  { %149 = vadd.xlane.f32.xlu0 %v148_v32 }
 0x1ba   :  { %v146_v54 = vpop.xlane.xlu0 %145 }
 0x1bb   :  { %v147_v55 = vmul.f32 0.03125, %v146_v54 }
 0x1bd   :  { %v152_v57 = vmul.f32 %v147_v55, %v147_v55  ;;  %v155_v62 = vsub.f32 %v141_v30, %v147_v55 }
 0x1be   :  { %v150_v56 = vpop.xlane.xlu0 %149 }
 0x1bf   :  { %v151_v58 = vmul.f32 0.03125, %v150_v56 }
 0x1c1   :  { %v153_v59 = vsub.f32 %v151_v58, %v152_v57 }
 0x1c3   :  { %v154_v60 = vmax.f32 %v153_v59, 0.0 }
 0x1c5   :  { %v156_v61 = vadd.f32 1e-05, %v154_v60 }
 0x1c7   :  { %433 = vrsqrt.f32 %v156_v61 }
 0x1d1   :  { %v434_v63 = vpop.eup %433 }
 0x1d2   :  { %v158_v1 = vmul.f32 %v434_v63, %v155_v62 }
 0x1d4   :  { %vm159_vm1 = vcmp.gt.f32.partialorder %v158_v1, 0.0  ;;  %v160_v2 = vmul.f32 0.01, %v158_v1 }
 0x1d6   :  { %v161_v3 = vsel %vm159_vm1, %v158_v1, %v160_v2 }
 0x1d7   :  { %374 = vmatmul.mubr.f32.vlgmr.msra.gmra.mrb[0].mxu1 %v161_v3 }
 0x2aa   :  { %v250_v0 = vpop.f32.mrb[0].mxu1 }
 0x2ab   :  { %254 = vst [vmem:[#allocation9] sm:$0xff] %v250_v0  ;;  %v375_v4 = vpop.f32.mrb[1].mxu1 }
 0x2ac   :  { %512 = shalt.err (!%p509_p0)
}
 0x2ad   :  { %s513_s25 = scalar_lea.hbm %s631_s3, 128 }
 0x2ae   :  { %p514_p1 = scmp.ne.s32.totalorder %s631_s3, %s513_s25  ;;  %p517_p2 = scmp.lt.u32.totalorder %s513_s25, %s631_s3 }
 0x2b0   :  { %p519_p3 = pnand %p517_p2, %p514_p1 }
 0x2b2   :  { %522 = shalt.err (!%p519_p3)
}
 0x2b3   :  { %264 = dma.vmem_to_hbm [thread:$0]  %s262_s21, 128, %s631_s3, [#allocation5]  }
 0x2b4   :  { %527 = dma.done.wait [#allocation5], 128  }
 0x2b5   :  { %528 = vsyncadd [#allocation5], 4294967168 }
 0x2b6   :  { %268 = vsyncpa [#allocation4], 1 }
 0x2b7   :  { %269 = vsyncpa [#allocation7], 1 }
 0x2b8   :  { %270 = vsyncpa [#allocation5], 1 }

</bundles_post_ra>
